<compile_context>
chip_gen: v7x
topology: tpu7x:2x2x1
jax: 0.10.0
libtpu: 0.0.40
codegen_flags: <defaults>
</compile_context>

<pallas_src>
import functools

import jax
import jax.numpy as jnp
from jax.experimental import pallas as pl
from jax.experimental.pallas import tpu as pltpu


def _ce_kernel(logits_ref, target_ref, sum_ref, cnt_ref, *,
               ignore_index, hw, tiles_per_core, coverage):
    """One (image, core, pixel-tile) grid step.

    logits_ref: (1, C, TP)    logits block (input dtype; math upcast in-register)
    target_ref: (1, 1, TP)    int32 labels
    sum_ref:    (1, 1, 1, 1)  per-(image, core) running NLL sum   (f32, resident)
    cnt_ref:    (1, 1, 1, 1)  per-(image, core) valid-pixel count (f32, resident)
    """
    i = pl.program_id(2)

    # New (image, core) slice -> its output block just became resident: zero it.
    @pl.when(i == 0)
    def _():
        sum_ref[...] = jnp.zeros_like(sum_ref)
        cnt_ref[...] = jnp.zeros_like(cnt_ref)

    t = target_ref[0]                                            # (1, TP) int32
    c_dim, tp = logits_ref.shape[1], logits_ref.shape[2]

    # Numerically-stable logsumexp over the class (sublane) axis.  Each expression
    # reads the block and casts in-place -- no reused (C, TP) f32 value is bound.
    m = jnp.max(logits_ref[0].astype(jnp.float32),
                axis=0, keepdims=True)                           # (1, TP)
    sumexp = jnp.sum(jnp.exp(logits_ref[0].astype(jnp.float32) - m),
                     axis=0, keepdims=True)                      # (1, TP)

    # Logit at the target class via one-hot select over C.  Out-of-range labels
    # (t >= C, t != ignore_index) pick 0 -> nll = lse (UB, like an unchecked gather).
    cls_ids = jax.lax.broadcasted_iota(jnp.int32, (c_dim, tp), 0)
    picked = jnp.sum(jnp.where(cls_ids == t,
                               logits_ref[0].astype(jnp.float32), 0.0),
                     axis=0, keepdims=True)                      # (1, TP)

    # nll = logsumexp(x) - x[target] = m + log(sumexp) - picked
    nll = m + jnp.log(sumexp) - picked                           # (1, TP)

    valid = t != ignore_index                                    # (1, TP) bool
    if coverage != hw:
        # Tail / clamped-duplicate tiles: mask pixels past the end of the image.
        # Must remain a true select (jnp.where) because tail logits/labels come
        # from an undefined boundary-block region (possibly NaN/Inf).
        gtile = pl.program_id(1) * tiles_per_core + i
        pix = gtile * tp + jax.lax.broadcasted_iota(jnp.int32, (1, tp), 1)
        valid = jnp.logical_and(valid, pix < hw)

    # Reduce each tile to scalars (XLU) and accumulate into the resident output
    # blocks -- removes the per-step (1, TP) accumulator load/store traffic.
    sum_ref[...] += jnp.sum(jnp.where(valid, nll, 0.0))
    cnt_ref[...] += jnp.sum(valid.astype(jnp.float32))


def _vmem_budgets():
    """Generation-aware sizing: logits-block byte budget + scoped-VMEM limit."""
    try:
        vmem = int(pltpu.get_tpu_info().vmem_capacity_bytes)
    except Exception:
        vmem = 64 << 20                      # conservative (v7x per-core VMEM)
    block_budget = max(4 << 20, vmem // 8)   # 16 MiB on v5e/v6e, 8 MiB on v7x
    vmem_limit = min(vmem - (16 << 20), 64 << 20)  # 64 MiB v5e/v6e, 48 MiB v7x
    return block_budget, vmem_limit


def _pick_tile(num_classes, hw, itemsize, tile_pixels, block_budget):
    if tile_pixels is None:
        # Pure bytes-based budget (no pixel cap); amortizes the ~0.35 us/step cost.
        tp = block_budget // max(1, num_classes * itemsize)
        tp = max(512, tp)
    else:
        tp = int(tile_pixels)
    tp = min(tp, hw)
    if tp < hw:
        tp = max(128, (tp // 128) * 128)     # non-full last block dim: multiple of 128
    return tp


def cross_entropy_loss(pred, target, ignore_index=255, *, tile_pixels=None):
    """pred: (N, C, H, W) float; target: (N, H, W) or (N, 1, H, W) int."""
    if target.ndim == 4:
        n_, c_, h_, w_ = target.shape
        assert c_ == 1, "segmentation mask must be single-channel"
        target = target.reshape(n_, h_, w_)

    N, C, H, W = pred.shape
    HW = H * W

    # ignore_index=None -> count every pixel; -1 never collides with a class id.
    ii = -1 if ignore_index is None else int(ignore_index)

    # Free reshapes only: no transpose, no pad, no dtype upcast in HBM.
    logits = pred.reshape(N, C, HW)
    labels = target.reshape(N, 1, HW).astype(jnp.int32)

    block_budget, vmem_limit = _vmem_budgets()
    tp = _pick_tile(C, HW, jnp.dtype(pred.dtype).itemsize, tile_pixels, block_budget)
    n_tiles = pl.cdiv(HW, tp)

    # Core-split of the tile range: second "parallel" axis keeps both v7x
    # TensorCores busy even at N=1; effectively a no-op on single-core v5e/v6e.
    ncores = 2 if n_tiles >= 2 else 1
    tiles_per_core = pl.cdiv(n_tiles, ncores)
    coverage = ncores * tiles_per_core * tp

    def pix_block(c, i):
        # Clamp duplicated trailing tiles to the last real block; the kernel
        # masks them out via the global pixel index.
        return jnp.minimum(c * tiles_per_core + i, n_tiles - 1)

    kernel = functools.partial(_ce_kernel, ignore_index=ii, hw=HW,
                               tiles_per_core=tiles_per_core, coverage=coverage)

    sum_out, cnt_out = pl.pallas_call(
        kernel,
        out_shape=(
            jax.ShapeDtypeStruct((N, ncores, 1, 1), jnp.float32),
            jax.ShapeDtypeStruct((N, ncores, 1, 1), jnp.float32),
        ),
        grid_spec=pltpu.PrefetchScalarGridSpec(
            num_scalar_prefetch=0,
            grid=(N, ncores, tiles_per_core),
            in_specs=[
                pl.BlockSpec((1, C, tp), lambda n, c, i: (n, 0, pix_block(c, i))),
                pl.BlockSpec((1, 1, tp), lambda n, c, i: (n, 0, pix_block(c, i))),
            ],
            out_specs=[
                pl.BlockSpec((1, 1, 1, 1), lambda n, c, i: (n, c, 0, 0)),
                pl.BlockSpec((1, 1, 1, 1), lambda n, c, i: (n, c, 0, 0)),
            ],
        ),
        compiler_params=pltpu.CompilerParams(
            dimension_semantics=("parallel", "parallel", "arbitrary"),
            vmem_limit_bytes=int(vmem_limit)),
    )(logits, labels)

    # mean over valid pixels (glue).  Matches torch: all-ignored -> 0/0 -> nan.
    return jnp.sum(sum_out) / jnp.sum(cnt_out)


def _reference_ce(pred, target, ignore_index=255):
    # pure-JAX reference for a sanity check
    N, C, H, W = pred.shape
    logits = jnp.transpose(pred, (0, 2, 3, 1)).reshape(-1, C).astype(jnp.float32)
    labels = target.reshape(-1)
    logp = jax.nn.log_softmax(logits, axis=-1)
    if ignore_index is not None:
        valid = labels != ignore_index
    else:
        valid = jnp.ones_like(labels, dtype=bool)
    safe_labels = jnp.where(valid, labels, 0)
    nll = -jnp.take_along_axis(logp, safe_labels[:, None], axis=-1)[:, 0]
    nll = jnp.where(valid, nll, 0.0)
    return jnp.sum(nll) / jnp.sum(valid.astype(jnp.float32))


if __name__ == "__main__":
    key = jax.random.PRNGKey(0)

    # Case 1: f32 logits, HW fits in a single tile (single grid step per image).
    k1, k2, k3, key = jax.random.split(key, 4)
    N, C, H, W = 2, 4, 16, 16
    pred = jax.random.normal(k1, (N, C, H, W), dtype=jnp.float32)
    target = jax.random.randint(k2, (N, H, W), 0, C, dtype=jnp.int32)
    target = jnp.where(jax.random.bernoulli(k3, 0.1, (N, H, W)), 255, target)

    loss = jax.block_until_ready(cross_entropy_loss(pred, target, ignore_index=255))
    ref = _reference_ce(pred, target, ignore_index=255)
    assert jnp.allclose(loss, ref, rtol=1e-5, atol=1e-5), (loss, ref)

    # Case 1b: ignore_index=None path (every pixel counted).
    tgt_all = jnp.clip(target, 0, C - 1)
    loss1b = jax.block_until_ready(cross_entropy_loss(pred, tgt_all, ignore_index=None))
    ref1b = _reference_ce(pred, tgt_all, ignore_index=None)
    assert jnp.allclose(loss1b, ref1b, rtol=1e-5, atol=1e-5), (loss1b, ref1b)

    # Case 2: bf16 logits, multi-tile grid with masked tail + core split
    # (HW=400, tile=128 -> 4 tiles -> 2 cores x 2 tiles); 4-D mask input path.
    k1, k2, k3, key = jax.random.split(key, 4)
    N2, C2, H2, W2 = 1, 5, 20, 20
    pred2 = jax.random.normal(k1, (N2, C2, H2, W2), dtype=jnp.bfloat16)
    target2 = jax.random.randint(k2, (N2, H2, W2), 0, C2, dtype=jnp.int32)
    target2 = jnp.where(jax.random.bernoulli(k3, 0.2, (N2, H2, W2)), 255, target2)

    loss2 = jax.block_until_ready(
        cross_entropy_loss(pred2, target2.reshape(N2, 1, H2, W2),
                           ignore_index=255, tile_pixels=128))
    ref2 = _reference_ce(pred2, target2, ignore_index=255)
    assert jnp.allclose(loss2, ref2, rtol=1e-4, atol=1e-5), (loss2, ref2)

    # Case 3: odd tile count -> the core split produces a clamped duplicate tile
    # that must be fully masked out (HW=384, tile=128 -> 3 tiles -> 2 cores x 2).
    k1, k2, k3, key = jax.random.split(key, 4)
    N3, C3, H3, W3 = 2, 3, 16, 24
    pred3 = jax.random.normal(k1, (N3, C3, H3, W3), dtype=jnp.float32)
    target3 = jax.random.randint(k2, (N3, H3, W3), 0, C3, dtype=jnp.int32)
    target3 = jnp.where(jax.random.bernoulli(k3, 0.15, (N3, H3, W3)), 255, target3)

    loss3 = jax.block_until_ready(
        cross_entropy_loss(pred3, target3, ignore_index=255, tile_pixels=128))
    ref3 = _reference_ce(pred3, target3, ignore_index=255)
    assert jnp.allclose(loss3, ref3, rtol=1e-5, atol=1e-5), (loss3, ref3)

    print("KERNEL_OK")
</pallas_src>

<mosaic_0001>
module attributes {stable_mosaic.version = 11 : i64} {
  func.func @_ce_kernel(%arg0: i32, %arg1: i32, %arg2: i32, %arg3: memref<1x4x256xf32, #tpu.memory_space<vmem>>, %arg4: memref<1x1x256xi32, #tpu.memory_space<vmem>>, %arg5: memref<1x1x1x1xf32, #tpu.memory_space<vmem>>, %arg6: memref<1x1x1x1xf32, #tpu.memory_space<vmem>>) attributes {dimension_semantics = [#tpu.dimension_semantics<parallel>, #tpu.dimension_semantics<parallel>, #tpu.dimension_semantics<arbitrary>], iteration_bounds = array<i64: 2, 1, 1>, scalar_prefetch = 0 : i64, scratch_operands = 0 : i64, tpu.core_type = #tpu.core_type<tc>, window_params = [{transform_indices = @transform_0, window_bounds = array<i64: 1, 4, 256>}, {transform_indices = @transform_1, window_bounds = array<i64: 1, 1, 256>}, {transform_indices = @transform_2, window_bounds = array<i64: 1, 1, 1, 1>}, {transform_indices = @transform_3, window_bounds = array<i64: 1, 1, 1, 1>}]} {
    %c0_i32 = arith.constant 0 : i32
    %0 = arith.cmpi eq, %arg2, %c0_i32 : i32
    %1 = arith.extui %0 : i1 to i32
    %c0_i32_0 = arith.constant 0 : i32
    %2 = arith.cmpi ne, %1, %c0_i32_0 : i32
    scf.if %2 {
      %cst_34 = arith.constant 0.000000e+00 : f32
      %50 = vector.broadcast %cst_34 : f32 to vector<1x1x1x1xf32>
      %c0_35 = arith.constant 0 : index
      %c0_36 = arith.constant 0 : index
      %c0_37 = arith.constant 0 : index
      %c0_38 = arith.constant 0 : index
      %51 = vector.load %arg5[%c0_35, %c0_36, %c0_37, %c0_38] : memref<1x1x1x1xf32, #tpu.memory_space<vmem>>, vector<1x1x1x1xf32>
      tpu.vector_store %arg5[%c0_35, %c0_36, %c0_37, %c0_38], %50 {strides = array<i32>} : memref<1x1x1x1xf32, #tpu.memory_space<vmem>>, vector<1x1x1x1xf32>,
      %cst_39 = arith.constant 0.000000e+00 : f32
      %52 = vector.broadcast %cst_39 : f32 to vector<1x1x1x1xf32>
      %c0_40 = arith.constant 0 : index
      %c0_41 = arith.constant 0 : index
      %c0_42 = arith.constant 0 : index
      %c0_43 = arith.constant 0 : index
      %53 = vector.load %arg6[%c0_40, %c0_41, %c0_42, %c0_43] : memref<1x1x1x1xf32, #tpu.memory_space<vmem>>, vector<1x1x1x1xf32>
      tpu.vector_store %arg6[%c0_40, %c0_41, %c0_42, %c0_43], %52 {strides = array<i32>} : memref<1x1x1x1xf32, #tpu.memory_space<vmem>>, vector<1x1x1x1xf32>,
    } else {
    }
    %c0 = arith.constant 0 : index
    %c0_1 = arith.constant 0 : index
    %c0_2 = arith.constant 0 : index
    %3 = vector.load %arg4[%c0, %c0_1, %c0_2] : memref<1x1x256xi32, #tpu.memory_space<vmem>>, vector<1x1x256xi32>
    %4 = vector.shape_cast %3 : vector<1x1x256xi32> to vector<1x256xi32>
    %c0_3 = arith.constant 0 : index
    %c0_4 = arith.constant 0 : index
    %c0_5 = arith.constant 0 : index
    %5 = vector.load %arg3[%c0_3, %c0_4, %c0_5] : memref<1x4x256xf32, #tpu.memory_space<vmem>>, vector<1x4x256xf32>
    %6 = vector.shape_cast %5 : vector<1x4x256xf32> to vector<4x256xf32>
    %cst = arith.constant dense<0xFF800000> : vector<256xf32>
    %7 = vector.multi_reduction <maximumf>, %6, %cst [0] : vector<4x256xf32> to vector<256xf32>
    %8 = vector.shape_cast %7 : vector<256xf32> to vector<1x256xf32>
    %c0_6 = arith.constant 0 : index
    %c0_7 = arith.constant 0 : index
    %c0_8 = arith.constant 0 : index
    %9 = vector.load %arg3[%c0_6, %c0_7, %c0_8] : memref<1x4x256xf32, #tpu.memory_space<vmem>>, vector<1x4x256xf32>
    %10 = vector.shape_cast %9 : vector<1x4x256xf32> to vector<4x256xf32>
    %11 = vector.broadcast %8 : vector<1x256xf32> to vector<4x256xf32>
    %12 = arith.subf %10, %11 : vector<4x256xf32>
    %13 = math.exp %12 : vector<4x256xf32>
    %cst_9 = arith.constant dense<0.000000e+00> : vector<256xf32>
    %14 = vector.multi_reduction <add>, %13, %cst_9 [0] : vector<4x256xf32> to vector<256xf32>
    %15 = vector.shape_cast %14 : vector<256xf32> to vector<1x256xf32>
    %16 = tpu.iota {dimensions = array<i32: 0>} : vector<4x256xi32>
    %17 = vector.broadcast %4 : vector<1x256xi32> to vector<4x256xi32>
    %18 = arith.cmpi eq, %16, %17 : vector<4x256xi32>
    %c0_10 = arith.constant 0 : index
    %c0_11 = arith.constant 0 : index
    %c0_12 = arith.constant 0 : index
    %19 = vector.load %arg3[%c0_10, %c0_11, %c0_12] : memref<1x4x256xf32, #tpu.memory_space<vmem>>, vector<1x4x256xf32>
    %20 = vector.shape_cast %19 : vector<1x4x256xf32> to vector<4x256xf32>
    %cst_13 = arith.constant 0.000000e+00 : f32
    %21 = vector.broadcast %cst_13 : f32 to vector<4x256xf32>
    %22 = arith.select %18, %20, %21 : vector<4x256xi1>, vector<4x256xf32>
    %cst_14 = arith.constant dense<0.000000e+00> : vector<256xf32>
    %23 = vector.multi_reduction <add>, %22, %cst_14 [0] : vector<4x256xf32> to vector<256xf32>
    %24 = vector.shape_cast %23 : vector<256xf32> to vector<1x256xf32>
    %25 = math.log %15 : vector<1x256xf32>
    %26 = arith.addf %8, %25 : vector<1x256xf32>
    %27 = arith.subf %26, %24 : vector<1x256xf32>
    %c255_i32 = arith.constant 255 : i32
    %28 = vector.broadcast %c255_i32 : i32 to vector<1x256xi32>
    %29 = arith.cmpi ne, %4, %28 : vector<1x256xi32>
    %c0_15 = arith.constant 0 : index
    %c0_16 = arith.constant 0 : index
    %c0_17 = arith.constant 0 : index
    %c0_18 = arith.constant 0 : index
    %30 = vector.load %arg5[%c0_15, %c0_16, %c0_17, %c0_18] : memref<1x1x1x1xf32, #tpu.memory_space<vmem>>, vector<1x1x1x1xf32>
    %cst_19 = arith.constant 0.000000e+00 : f32
    %31 = vector.broadcast %cst_19 : f32 to vector<1x256xf32>
    %32 = arith.select %29, %27, %31 : vector<1x256xi1>, vector<1x256xf32>
    %33 = vector.shape_cast %32 : vector<1x256xf32> to vector<1x1x256xf32>
    %cst_20 = arith.constant dense<0.000000e+00> : vector<1xf32>
    %34 = vector.multi_reduction <add>, %33, %cst_20 [1, 2] : vector<1x1x256xf32> to vector<1xf32>
    %35 = vector.shape_cast %34 : vector<1xf32> to vector<1x1x1xf32>
    %36 = vector.extract %35[0, 0, 0] : f32 from vector<1x1x1xf32>
    %37 = vector.broadcast %36 : f32 to vector<1x1x1x1xf32>
    %38 = arith.addf %30, %37 : vector<1x1x1x1xf32>
    %c0_21 = arith.constant 0 : index
    %c0_22 = arith.constant 0 : index
    %c0_23 = arith.constant 0 : index
    %c0_24 = arith.constant 0 : index
    %39 = vector.load %arg5[%c0_21, %c0_22, %c0_23, %c0_24] : memref<1x1x1x1xf32, #tpu.memory_space<vmem>>, vector<1x1x1x1xf32>
    tpu.vector_store %arg5[%c0_21, %c0_22, %c0_23, %c0_24], %38 {strides = array<i32>} : memref<1x1x1x1xf32, #tpu.memory_space<vmem>>, vector<1x1x1x1xf32>,
    %c0_25 = arith.constant 0 : index
    %c0_26 = arith.constant 0 : index
    %c0_27 = arith.constant 0 : index
    %c0_28 = arith.constant 0 : index
    %40 = vector.load %arg6[%c0_25, %c0_26, %c0_27, %c0_28] : memref<1x1x1x1xf32, #tpu.memory_space<vmem>>, vector<1x1x1x1xf32>
    %41 = arith.extui %29 : vector<1x256xi1> to vector<1x256xi32>
    %42 = arith.sitofp %41 : vector<1x256xi32> to vector<1x256xf32>
    %43 = vector.shape_cast %42 : vector<1x256xf32> to vector<1x1x256xf32>
    %cst_29 = arith.constant dense<0.000000e+00> : vector<1xf32>
    %44 = vector.multi_reduction <add>, %43, %cst_29 [1, 2] : vector<1x1x256xf32> to vector<1xf32>
    %45 = vector.shape_cast %44 : vector<1xf32> to vector<1x1x1xf32>
    %46 = vector.extract %45[0, 0, 0] : f32 from vector<1x1x1xf32>
    %47 = vector.broadcast %46 : f32 to vector<1x1x1x1xf32>
    %48 = arith.addf %40, %47 : vector<1x1x1x1xf32>
    %c0_30 = arith.constant 0 : index
    %c0_31 = arith.constant 0 : index
    %c0_32 = arith.constant 0 : index
    %c0_33 = arith.constant 0 : index
    %49 = vector.load %arg6[%c0_30, %c0_31, %c0_32, %c0_33] : memref<1x1x1x1xf32, #tpu.memory_space<vmem>>, vector<1x1x1x1xf32>
    tpu.vector_store %arg6[%c0_30, %c0_31, %c0_32, %c0_33], %48 {strides = array<i32>} : memref<1x1x1x1xf32, #tpu.memory_space<vmem>>, vector<1x1x1x1xf32>,
    return
  }
  func.func @transform_0(%arg0: i32, %arg1: i32, %arg2: i32) -> (i32, i32, i32) {
    %c1_i32 = arith.constant 1 : i32
    %0 = arith.muli %arg1, %c1_i32 : i32
    %1 = arith.addi %0, %arg2 : i32
    %c0_i32 = arith.constant 0 : i32
    %2 = arith.minsi %1, %c0_i32 : i32
    %c0_i32_0 = arith.constant 0 : i32
    %c0_i32_1 = arith.constant 0 : i32
    return %arg0, %c0_i32_0, %2 : i32, i32, i32
  }
  func.func @transform_1(%arg0: i32, %arg1: i32, %arg2: i32) -> (i32, i32, i32) {
    %c1_i32 = arith.constant 1 : i32
    %0 = arith.muli %arg1, %c1_i32 : i32
    %1 = arith.addi %0, %arg2 : i32
    %c0_i32 = arith.constant 0 : i32
    %2 = arith.minsi %1, %c0_i32 : i32
    %c0_i32_0 = arith.constant 0 : i32
    %c0_i32_1 = arith.constant 0 : i32
    return %arg0, %c0_i32_0, %2 : i32, i32, i32
  }
  func.func @transform_2(%arg0: i32, %arg1: i32, %arg2: i32) -> (i32, i32, i32, i32) {
    %c0_i32 = arith.constant 0 : i32
    %c0_i32_0 = arith.constant 0 : i32
    %c0_i32_1 = arith.constant 0 : i32
    return %arg0, %arg1, %c0_i32, %c0_i32_0 : i32, i32, i32, i32
  }
  func.func @transform_3(%arg0: i32, %arg1: i32, %arg2: i32) -> (i32, i32, i32, i32) {
    %c0_i32 = arith.constant 0 : i32
    %c0_i32_0 = arith.constant 0 : i32
    %c0_i32_1 = arith.constant 0 : i32
    return %arg0, %arg1, %c0_i32, %c0_i32_0 : i32, i32, i32, i32
  }
}

</mosaic_0001>

<bundles_post_ra>
// kernel: tpu_custom_call.1
= control target key start
LH: loop header
LB: loop body
LE: loop exit
PB: predicated region body
PF: predicated region fallthrough
CT: control target
= control target key end

     0   :  { %9 = vsyncpa [#allocation3], 0  ;;  %s1030_s0 = inlined_call_operand.hbm [shape: f32[2,4,256], index: 0, kind: input, shape index: {}]   ;;  %s1031_s1 = inlined_call_operand.hbm [shape: s32[2,1,256], index: 1, kind: input, shape index: {}]   ;;  %s1032_s2 = inlined_call_operand.vmem [shape: f32[2,1,1,1], index: 2, kind: output, shape index: {0}]   ;;  %s1033_s3 = inlined_call_operand.vmem [shape: f32[2,1,1,1], index: 3, kind: output, shape index: {1}]  }
   0x1   :  { %11 = vsyncpa [#allocation3 + $0x1], 0 }
   0x2   :  { %12 = vsyncpa [#allocation5], 0 }
   0x3   :  { %14 = vsyncpa [#allocation5 + $0x1], 0  ;;  %s841_s12 = smov 0   ;;  %s843_s13 = smov 0  }
   0x4   :  { %s845_s14 = smov 0   ;;  %s847_s15 = smov 0  }
   0x5   :  { %s849_s16 = smov 0   ;;  %s851_s17 = smov 0  }
   0x6 LB: > { %s610_s18 = sadd.s32 4294967295, %s815_s17   ;;  %s39_s19 = sadd.s32 1, %s811_s16  ;;  %s815_s17 = sphi %s851_s17, %s20_s17   ;;  %s811_s16 = sphi %s849_s16, %s1047_s16   ;;  %s807_s15 = sphi %s847_s15, %s1046_s15   ;;  %s803_s14 = sphi %s845_s14, %s1045_s14   ;;  %s799_s13 = sphi %s843_s13, %s1044_s13   ;;  %s795_s12 = sphi %s841_s12, %s1043_s12  }
   0x7   : > { %p41_p0 = scmp.ge.s32.totalorder %s39_s19, 2  ;;  %s54_s20 = sadd.s32 1, %s803_s14 }
   0x8   : > { %p61_p1 = scmp.ne.s32.totalorder %s803_s14, %s799_s13  ;;  %p62_p2 = scmp.eq.s32.totalorder %s815_s17, 0 }
   0x9   : > { %s1049_s19 = smov (%p41_p0, %s39_s19), 0  ;;  %p67_p4 = scmp.ne.s32.totalorder %s799_s13, %s795_s12 }
   0xa   : > { %p877_p3 = por %p62_p2, %p61_p1  ;;  %s49_s22 = ssub.s32 %s811_s16, %s1049_s19 }
   0xb   : > { %p68_p5 = scmp.eq.s32.totalorder %s610_s18, 0  ;;  %p52_p6 = scmp.eq.s32.totalorder %s49_s22, 0 }
   0xc   : > { %p643_p8 = scmp.lt.s32.totalorder %s815_s17, 2  ;;  %s893_s25 = sand.u32 1, %s803_s14  }
   0xd   : > { %p884_p7 = por %p68_p5, %p67_p4  ;;  %s626_s26 = sshll.u32 %s811_s16, 7 }
   0xe   : > { %s890_s24 = scalar_select %p52_p6, %s803_s14, %s54_s20  }
   0xf   : > { %s1036_s23 = scalar_select %p884_p7, 1, 0 }
  0x10   : > { %s614_s27 = sshll.u32 %s893_s25, 3  ;;  %s900_s30 = scalar_lea.hbm %s1030_s0, %s626_s26 }
  0x11   : > { %s185_s4 = scalar_lea.vmem [#allocation2], %s614_s27  ;;  %p904_p9 = pnand %p643_p8, %p877_p3 }
  0x12   : > { %s198_s5 = sshll.u32 %s185_s4, 4  ;;  %s182_s7 = scalar_lea.sflag [#allocation3], %s893_s25  ;;  %s908_s5 = int_to_ptr.vmem [resolvable:$true] %s198_s5 }
  0x13   : > { %s701_s8 = scalar_lea.hbm %s900_s30, 128  ;;  %p703_p13 = pneg %p904_p9 }
  0x14   : > { %p702_p12 = scmp.ne.s32.totalorder %s900_s30, %s701_s8  ;;  %s706_s11 = scalar_lea.hbm %s1030_s0, 256 }
  0x15   : > { %p707_p2 = scmp.lt.u32.totalorder %s900_s30, %s1030_s0  ;;  %p708_p3 = scmp.lt.u32.totalorder %s706_s11, %s701_s8 }
  0x16   : > { %p704_p0 = pnand %p703_p13, %p702_p12  ;;  %p710_p5 = scmp.lt.u32.totalorder %s701_s8, %s900_s30 }
  0x17   : > { %p709_p4 = por %p708_p3, %p707_p2 }
  0x18   : > { %p705_p1 = pneg %p704_p0 }
  0x19   : > { %p711_p6 = por %p710_p5, %p709_p4 }
  0x1b   : > { %p712_p8 = pnand %p711_p6, %p705_p1 }
  0x1d   : > { %715 = shalt.err (!%p712_p8)
}
  0x1e   : > { %s716_s20 = scalar_lea.vmem %s908_s5, 128  ;;  %s817_s21 = smov [#allocation2]  }
  0x1f   : > { %p717_p12 = scmp.ne.s32.totalorder %s908_s5, %s716_s20  ;;  %s721_s22 = sshll.u32 %s817_s21, 4  ;;  %s722_s22 = int_to_ptr.vmem [resolvable:$false] %s721_s22 }
  0x20   : > { %s723_s26 = scalar_lea.vmem %s722_s22, 256  ;;  %p724_p11 = scmp.lt.s32.totalorder %s908_s5, %s722_s22 }
  0x21   : > { %p719_p0 = pnand %p717_p12, %p703_p13  ;;  %p725_p2 = scmp.lt.s32.totalorder %s723_s26, %s716_s20 }
  0x23   : > { %p720_p10 = pneg %p719_p0  ;;  %p726_p3 = por %p725_p2, %p724_p11 }
  0x25   : > { %p727_p4 = pnand %p726_p3, %p720_p10 }
  0x27   : > { %730 = shalt.err (!%p727_p4)
}
  0x28   : > { %639 = dma.hbm_to_vmem [thread:$0]  (!%p904_p9), %s900_s30, 128, %s908_s5, %s182_s7  }
  0x29   : > { %p1038_p1 = scmp.lt.s32.totalorder %s815_s17, 3  ;;  %p1039_p5 = scmp.ge.s32.totalorder %s815_s17, 1 }
  0x2a   : > { %s617_s28 = sshll.u32 %s893_s25, 1  ;;  %s627_s29 = sshll.u32 %s811_s16, 5 }
  0x2b   : > { %p942_p6 = pnand %p1039_p5, %p1038_p1  ;;  %s951_s9 = scalar_lea.hbm %s1031_s1, %s627_s29 }
  0x2c   : > { %s209_s10 = scalar_lea.vmem [#allocation4], %s617_s28  ;;  %s206_s30 = scalar_lea.sflag [#allocation5], %s893_s25 }
  0x2d   : > { %s1040_s27 = scalar_select %p942_p6, 1, 0 }
  0x2e   : > { %s222_s11 = sshll.u32 %s209_s10, 4  ;;  %s731_s5 = scalar_lea.hbm %s951_s9, 32  ;;  %s223_s11 = int_to_ptr.vmem [resolvable:$true] %s222_s11 }
  0x2f   : > { %p732_p10 = scmp.ne.s32.totalorder %s951_s9, %s731_s5  ;;  %s736_s18 = scalar_lea.hbm %s1031_s1, 64 }
  0x30   : > { %p737_p12 = scmp.lt.u32.totalorder %s951_s9, %s1031_s1  ;;  %p738_p0 = scmp.lt.u32.totalorder %s736_s18, %s731_s5 }
  0x31   : > { %p734_p11 = pnand %p732_p10, %p703_p13  ;;  %p740_p3 = scmp.lt.u32.totalorder %s731_s5, %s951_s9 }
  0x32   : > { %p739_p2 = por %p738_p0, %p737_p12 }
  0x33   : > { %p735_p8 = pneg %p734_p11 }
  0x34   : > { %p741_p4 = por %p740_p3, %p739_p2 }
  0x36   : > { %p742_p1 = pnand %p741_p4, %p735_p8 }
  0x38   : > { %745 = shalt.err (!%p742_p1)
}
  0x39   : > { %s746_s25 = scalar_lea.vmem %s223_s11, 32  ;;  %s818_s22 = smov [#allocation4]  }
  0x3a   : > { %p747_p5 = scmp.ne.s32.totalorder %s223_s11, %s746_s25  ;;  %s751_s26 = sshll.u32 %s818_s22, 4  ;;  %s752_s26 = int_to_ptr.vmem [resolvable:$false] %s751_s26 }
  0x3b   : > { %s753_s28 = scalar_lea.vmem %s752_s26, 64  ;;  %p754_p7 = scmp.lt.s32.totalorder %s223_s11, %s752_s26 }
  0x3c   : > { %p749_p10 = pnand %p747_p5, %p703_p13  ;;  %p755_p6 = scmp.lt.s32.totalorder %s753_s28, %s746_s25 }
  0x3e   : > { %p750_p11 = pneg %p749_p10  ;;  %p756_p0 = por %p755_p6, %p754_p7 }
  0x40   : > { %p757_p12 = pnand %p756_p0, %p750_p11 }
  0x42   : > { %760 = shalt.err (!%p757_p12)
}
  0x43   : > { %642 = dma.hbm_to_vmem [thread:$0]  (!%p904_p9), %s951_s9, 32, %s223_s11, %s206_s30  }
  0x44   : > { %p1041_p8 = scmp.ne.s32.totalorder %s1040_s27, 0 }
  0x45   : > { %s233_s29 = sand.u32 (!%p1041_p8), 1, %s799_s13   ;;  %p1042_p13 = scmp.ne.s32.totalorder (!%p1041_p8), %s1036_s23, 0 }
  0x46   : > { %231 = sbr.rel (%p1041_p8) target bundleno = 370 (0x172), region = 28  ;;  %s621_s4 = sshll.u32 (!%p1041_p8), %s233_s29, 3 }
  0x47   : > { %s234_s8 = scalar_lea.sflag (!%p1041_p8), [#allocation3], %s233_s29  ;;  %s237_s10 = scalar_lea.vmem (!%p1041_p8), [#allocation2], %s621_s4 }
  0x4d   : > { %786 = dma.done.wait (%p1042_p13), %s234_s8, 128  }
  0x4e   : > { %788 = vsyncadd (%p1042_p13), %s234_s8, 4294967168  ;;  %s622_s5 = sshll.u32 %s233_s29, 1  ;;  %s243_s7 = scalar_lea.sflag [#allocation5], %s233_s29 }
  0x4f   : > { %s246_s6 = scalar_lea.vmem [#allocation4], %s622_s5 }
  0x50   : > { %790 = dma.done.wait (%p1042_p13), %s243_s7, 32  }
  0x51   : > { %792 = vsyncadd (%p1042_p13), %s243_s7, 4294967264  ;;  %vm313_vm0 = vcmask 1043456   ;;  %v309_v0 = vld [vmem:[%s237_s10] sm:$0xff]  ;;  %v352_v15 = vlaneseq  ;;  %v308_v22 = vld [vmem:[%s246_s6] sm:$0x3]  ;;  %vm420_vm4 = vcmask 1040384  }
  0x52   : > { %v311_v1 = vcombine.high %v309_v0, %v309_v0  ;;  %v314_v2 = vsel %vm313_vm0, %v309_v0, -inf  ;;  %v819_v56 = vmov 1966171168   ;;  %vm388_vm3 = vcmp.ne.s32.totalorder %v308_v22, 255  ;;  %p289_p7 = scmp.lt.s32.totalorder %s807_s15, 1 }
  0x53   : > { %v315_v3 = vrot.slane %v314_v2, 4  ;;  %v353_v18 = vshrl.u32 %v352_v15, 7  ;;  %v394_v57 = vunpack.c.l.s4 %v819_v56  ;;  %vm305_vm5 = vcmask 0  }
  0x54   : > { %v321_v4 = vsel %vm313_vm0, %v311_v1, -inf  ;;  %s1051_s15 = smov (!%p289_p7, %s807_s15), 1 }
  0x55   : > { %v316_v5 = vmax.f32 %v314_v2, %v315_v3  ;;  %v322_v6 = vrot.slane %v321_v4, 4  ;;  %v986_v21 = vsub.s32 0, %v353_v18  ;;  %v988_v23 = vsub.s32 1, %v353_v18  ;;  %s294_s9 = scalar_lea.vmem %s1032_s2, %s1051_s15  ;;  %s300_s12 = scalar_lea.vmem %s1033_s3, %s1051_s15 }
  0x57   : > { %v317_v7 = vrot.slane %v316_v5, 2  ;;  %v323_v8 = vmax.f32 %v321_v4, %v322_v6  ;;  %v357_v24 = vrot.slane %v308_v22, %v986_v21  ;;  %v361_v25 = vrot.slane %v308_v22, %v988_v23 }
  0x59   : > { %v318_v9 = vmax.f32 %v316_v5, %v317_v7  ;;  %v324_v10 = vrot.slane %v323_v8, 2  ;;  %vm362_vm1 = vcmp.eq.s32.totalorder %v353_v18, %v357_v24  ;;  %vm363_vm2 = vcmp.eq.s32.totalorder %v353_v18, %v361_v25 }
  0x5a   : > { %v364_v26 = vsel %vm362_vm1, %v309_v0, 0.0  ;;  %v365_v30 = vsel %vm363_vm2, %v311_v1, 0.0  ;;  %v395_v1 = vunpack.c.0.s8 %v394_v57 }
  0x5b   : > { %v319_v11 = vrot.slane %v318_v9, 1  ;;  %v325_v12 = vmax.f32 %v323_v8, %v324_v10  ;;  %v366_v32 = vsel %vm313_vm0, %v364_v26, 0.0  ;;  %v373_v36 = vsel %vm313_vm0, %v365_v30, 0.0 }
  0x5c   : > { %v367_v37 = vrot.slane %v366_v32, 4  ;;  %v374_v40 = vrot.slane %v373_v36, 4  ;;  %v398_v5 = vsub.s32 %v395_v1, %v353_v18  ;;  %v820_v8 = vmov 0.0  }
  0x5d   : > { %v320_v13 = vmax.f32 %v318_v9, %v319_v11  ;;  %v326_v14 = vrot.slane %v325_v12, 1  ;;  %v623_v9 = vsel %vm388_vm3, 1.0, %v820_v8  ;;  %306 = vst.msk [vmem:[%s294_s9] sm:$0x1] %vm305_vm5, %v820_v8  ;;  %307 = vst.msk [vmem:[%s300_s12] sm:$0x1] %vm305_vm5, %v820_v8 }
  0x5e   : > { %v368_v43 = vadd.f32 %v367_v37, %v366_v32  ;;  %v375_v46 = vadd.f32 %v374_v40, %v373_v36  ;;  %v444_v11 = vrot.slane %v623_v9, %v986_v21 }
  0x5f   : > { %v327_v16 = vmax.f32 %v325_v12, %v326_v14  ;;  %v448_v12 = vrot.slane %v623_v9, %v988_v23 }
  0x60   : > { %v369_v49 = vrot.slane %v368_v43, 2  ;;  %v376_v51 = vrot.slane %v375_v46, 2  ;;  %v451_v18 = vsel %vm420_vm4, %v444_v11, 0.0 }
  0x61   : > { %v330_v17 = vcombine.low %v320_v13, %v327_v16 }
  0x62   : > { %v370_v52 = vadd.f32 %v369_v49, %v368_v43  ;;  %v377_v53 = vadd.f32 %v376_v51, %v375_v46 }
  0x63   : > { %v332_v19 = vsub.f32 %v309_v0, %v330_v17 }
  0x64   : > { %v371_v54 = vrot.slane %v370_v52, 1  ;;  %v378_v55 = vrot.slane %v377_v53, 1  ;;  %v389_v36 = vld [vmem:[%s294_s9] sm:$0x1] }
  0x65   : > { %v333_v20 = vmul.f32 1.442695, %v332_v19  ;;  %v452_v19 = vsel %vm420_vm4, %v448_v12, 0.0 }
  0x66   : > { %v372_v59 = vadd.f32 %v371_v54, %v370_v52  ;;  %v379_v62 = vadd.f32 %v378_v55, %v377_v53  ;;  %v453_v22 = vadd.f32 %v452_v19, %v451_v18 }
  0x67   : > { %695 = vpow2.f32 %v333_v20 }
  0x71   : > { %v696_v27 = vpop.eup %695 }
  0x72   : > { %v336_v28 = vcombine.high %v696_v27, %v696_v27  ;;  %v338_v29 = vsel %vm313_vm0, %v696_v27, 0.0 }
  0x73   : > { %v339_v31 = vrot.slane %v338_v29, 4 }
  0x74   : > { %v345_v33 = vsel %vm313_vm0, %v336_v28, 0.0 }
  0x75   : > { %v340_v34 = vadd.f32 %v339_v31, %v338_v29  ;;  %v346_v35 = vrot.slane %v345_v33, 4 }
  0x77   : > { %v341_v38 = vrot.slane %v340_v34, 2  ;;  %v347_v39 = vadd.f32 %v346_v35, %v345_v33 }
  0x79   : > { %v342_v41 = vadd.f32 %v341_v38, %v340_v34  ;;  %v348_v42 = vrot.slane %v347_v39, 2 }
  0x7b   : > { %v343_v44 = vrot.slane %v342_v41, 1  ;;  %v349_v45 = vadd.f32 %v348_v42, %v347_v39  ;;  %v437_v39 = vld [vmem:[%s300_s12] sm:$0x1] }
  0x7d   : > { %v344_v47 = vadd.f32 %v343_v44, %v342_v41  ;;  %v350_v48 = vrot.slane %v349_v45, 1 }
  0x7f   : > { %v351_v50 = vadd.f32 %v350_v48, %v349_v45  ;;  %697 = vlog2.f32 %v344_v47 }
  0x81   : > { %699 = vlog2.f32 %v351_v50 }
  0x89   : > { %v698_v58 = vpop.eup %697 }
  0x8a   : > { %v381_v60 = vmul.f32 0.6931472, %v698_v58 }
  0x8b   : > { %v700_v61 = vpop.eup %699 }
  0x8c   : > { %v383_v63 = vmul.f32 0.6931472, %v700_v61  ;;  %v384_v0 = vadd.f32 %v381_v60, %v320_v13 }
  0x8e   : > { %v385_v2 = vadd.f32 %v383_v63, %v327_v16  ;;  %v386_v3 = vsub.f32 %v384_v0, %v372_v59 }
  0x90   : > { %v387_v4 = vsub.f32 %v385_v2, %v379_v62 }
  0x92   : > { %v392_v6 = vcombine.low %v386_v3, %v387_v4 }
  0x94   : > { %v399_v7 = vrot.slane %v392_v6, %v398_v5 }
  0x96   : > { %v406_v10 = vrot.slane %v399_v7, %v398_v5 }
  0x98   : > { %v408_v14 = vsel %vm388_vm3, %v406_v10, 0.0 }
  0x99   : > { %v413_v13 = vrot.slane %v408_v14, %v986_v21  ;;  %v417_v15 = vrot.slane %v408_v14, %v988_v23 }
  0x9b   : > { %v421_v16 = vsel %vm420_vm4, %v413_v13, 0.0  ;;  %v422_v17 = vsel %vm420_vm4, %v417_v15, 0.0 }
  0x9c   : > { %v423_v20 = vadd.f32 %v422_v17, %v421_v16 }
  0x9e   : > { %424 = vadd.xlane.f32.xlu0 %v423_v20 }
  0xa2   : > { %454 = vadd.xlane.f32.xlu0 %v453_v22 }
 0x12b   : > { %v425_v21 = vpop.xlane.xlu0 %424 }
 0x12c   : > { %v426_v23 = vrot.slane %v425_v21, 4 }
 0x12e   : > { %v427_v24 = vadd.f32 %v426_v23, %v425_v21 }
 0x12f   : > { %v455_v25 = vpop.xlane.xlu0 %454 }
 0x130   : > { %v428_v26 = vrot.slane %v427_v24, 2  ;;  %v456_v27 = vrot.slane %v455_v25, 4 }
 0x132   : > { %v457_v28 = vadd.f32 %v456_v27, %v455_v25  ;;  %v429_v29 = vadd.f32 %v428_v26, %v427_v24 }
 0x134   : > { %v458_v30 = vrot.slane %v457_v28, 2  ;;  %v430_v31 = vrot.slane %v429_v29, 1 }
 0x136   : > { %v459_v32 = vadd.f32 %v458_v30, %v457_v28  ;;  %v431_v33 = vadd.f32 %v430_v31, %v429_v29 }
 0x138   : > { %628 = vpush %v431_v33  ;;  %v460_v34 = vrot.slane %v459_v32, 1 }
 0x13a   : > { %v461_v35 = vadd.f32 %v460_v34, %v459_v32 }
 0x13c   : > { %630 = vpush %v461_v35 }
 0x169   : > { %s629_s15 = spop %628 }
 0x16a   : > { %v433_v37 = vstv %s629_s15 }
 0x16b   : > { %v434_v38 = vadd.f32 %v433_v37, %v389_v36 }
 0x16d   : > { %436 = vst.msk [vmem:[%s294_s9] sm:$0x1] %vm305_vm5, %v434_v38  ;;  %s631_s18 = spop %630 }
 0x16e   : > { %v463_v40 = vstv %s631_s18 }
 0x16f   : > { %v464_v41 = vadd.f32 %v463_v40, %v437_v39 }
 0x171   : > { %465 = vst.msk [vmem:[%s300_s12] sm:$0x1] %vm305_vm5, %v464_v41 }
 0x172 PF: > { %s20_s17 = sadd.s32 1, %s815_s17   ;;  %s1043_s12 = smov %s799_s13 }
 0x173   : > { %p17_p9 = scmp.ge.s32.totalorder %s20_s17, 4   ;;  %s1044_s13 = smov %s803_s14 }
 0x174   : > { %s1045_s14 = smov %s890_s24  ;;  %s1046_s15 = smov %s811_s16 }
 0x175   : > { %s1047_s16 = smov %s1049_s19  ;;  %19 = sbr.rel (!%p17_p9) target bundleno = 6 (0x6), region = 97 }
 0x17c   :  { %507 = vsyncpa [#allocation3], 1 }
 0x17d   :  { %509 = vsyncpa [#allocation3 + $0x1], 1 }
 0x17e   :  { %510 = vsyncpa [#allocation5], 1 }
 0x17f   :  { %512 = vsyncpa [#allocation5 + $0x1], 1 }

</bundles_post_ra>
